<compile_context>
chip_gen: v7x
topology: tpu7x:2x2x1
jax: 0.10.0
libtpu: 0.0.40
codegen_flags: <defaults>
</compile_context>

<pallas_src>
import functools

import jax
import jax.numpy as jnp
from jax import lax
from jax.experimental import pallas as pl
from jax.experimental.pallas import tpu as pltpu


def _mutan_kernel(xv_ref, xs_ref, xt_ref, wv_ref, bv_ref, wt_ref, bt_ref,
                  o_ref, *, heads, cout, act_dtype):
    """Channel-major blocks: pixels on lanes, channels on sublanes.
       xv_ref:(1,Cv,T)  xs_ref:(1,Cs,T)  xt_ref:(1,Ct,T)
       wv_ref:(H*Co, Cv+Cs)  wt_ref:(H*Co, Ct)   (matmul dtype, heads folded)
       bv_ref/bt_ref:(H*Co, 1) f32
       o_ref:(1,Co,T)"""
    wv = wv_ref[...]
    wt = wt_ref[...]
    mm_dtype = wv.dtype

    # Fused video+spatial operand assembled in VMEM (tiny (Cv+Cs, T) copy);
    # the torch.cat never touches HBM and only one MXU dot is issued for it.
    x_vs = jnp.concatenate([xv_ref[0], xs_ref[0]], axis=0).astype(mm_dtype)
    xt = xt_ref[0].astype(mm_dtype)

    # Per-modality pre-activations for ALL heads at once: (H*Co, T), f32 accum.
    pre_v = jnp.dot(wv, x_vs, preferred_element_type=jnp.float32) + bv_ref[...]
    pre_t = jnp.dot(wt, xt, preferred_element_type=jnp.float32) + bt_ref[...]

    # EUP-bound part: tanh chain in act_dtype (bf16 on v6e/v7x ~2x EUP rate,
    # f32 on v5e-and-older where there is no bf16 EUP).
    prod = jnp.tanh(pre_v.astype(act_dtype)) * jnp.tanh(pre_t.astype(act_dtype))

    # Sum over heads via static sublane slices (copy-free when cout % 8 == 0).
    acc = prod[0:cout, :]
    for h in range(1, heads):
        acc = acc + prod[h * cout:(h + 1) * cout, :]

    y = jnp.tanh(acc).astype(jnp.float32)             # (Co, T)
    # F.normalize(y, dim=channel): y / max(||y||, 1e-12)
    #                           == y * rsqrt(max(||y||^2, 1e-24))
    sumsq = jnp.sum(y * y, axis=0, keepdims=True)      # sublane reduce -> (1, T)
    inv = lax.rsqrt(jnp.maximum(sumsq, 1e-24))
    o_ref[0] = (y * inv).astype(o_ref.dtype)


def _device_defaults():
    """(act_dtype, tile_target) picked from the attached TPU generation."""
    try:
        kind = jax.devices()[0].device_kind.lower()
    except Exception:
        kind = ""
    old = any(t in kind for t in ("v2", "v3", "v4", "v5"))
    if old:
        # v5e: no bf16 VPU/EUP (bf16 tanh only adds casts) and a 16 MiB
        # scoped-VMEM default -> keep f32 activations and a smaller tile.
        return jnp.float32, 4096
    return jnp.bfloat16, 8192


def _choose_tile(n, target):
    """Pixel tile: full extent when it fits, else the largest multiple of 128
    <= target that divides n; else just a multiple of 128 (the ragged last
    block is handled by Pallas' masked writeback -- no HBM padding pass)."""
    if n <= target:
        return n
    cap = max((target // 128) * 128, 128)
    t = cap
    while t >= 128:
        if n % t == 0:
            return t
        t -= 128
    return cap


def prepare_mutan_params(params, matmul_dtype=jnp.bfloat16):
    """One-time weight re-layout (hoisted out of the per-call path):
    (H, Cin, Co) 1x1-conv weights -> (H*Co, Cin) folded-heads matmul weights."""
    wv, bv, wt, bt = params["wv"], params["bv"], params["wt"], params["bt"]
    heads, cin_v, cout = wv.shape
    cin_t = wt.shape[1]
    hco = heads * cout
    return {
        "wv": jnp.transpose(wv, (0, 2, 1)).reshape(hco, cin_v).astype(matmul_dtype),
        "wt": jnp.transpose(wt, (0, 2, 1)).reshape(hco, cin_t).astype(matmul_dtype),
        "bv": bv.reshape(hco, 1).astype(jnp.float32),
        "bt": bt.reshape(hco, 1).astype(jnp.float32),
        "heads": heads,
        "cout": cout,
    }


def mutan_pallas(video_fea, text_fea, spatial, prepared, *, tile_n=None,
                 act_dtype=None, out_dtype=jnp.float32):
    """video_fea: (B, Cv, H, W), text_fea: (B, Ct, H, W), spatial: (B, Cs, H, W)
       prepared: output of prepare_mutan_params()
       returns: (B, Co, H, W) in out_dtype."""
    heads, cout = prepared["heads"], prepared["cout"]
    wv_all, wt_all = prepared["wv"], prepared["wt"]
    bv_all, bt_all = prepared["bv"], prepared["bt"]

    B, cv, H, W = video_fea.shape
    cs = spatial.shape[1]
    ct = text_fea.shape[1]
    hco = heads * cout
    assert wv_all.shape == (hco, cv + cs) and wt_all.shape == (hco, ct)

    default_act, default_tile = _device_defaults()
    if act_dtype is None:
        act_dtype = default_act
    if tile_n is None:
        tile_n = default_tile

    hw = H * W
    fold_batch = hw < 128 and B > 1
    if fold_batch:
        # Small feature maps: collapse batch into the lane axis so the output
        # store is lane-dense (avoids masked vst.msk partial stores). The
        # transpose is negligible at these sizes.
        def fold(x):
            c = x.shape[1]
            return x.reshape(B, c, hw).transpose(1, 0, 2).reshape(1, c, B * hw)
        xv, xs, xt = fold(video_fea), fold(spatial), fold(text_fea)
        n_b, n_pix = 1, B * hw
    else:
        xv = video_fea.reshape(B, cv, hw)
        xs = spatial.reshape(B, cs, hw)
        xt = text_fea.reshape(B, ct, hw)
        n_b, n_pix = B, hw

    tile = _choose_tile(n_pix, tile_n)
    n_tiles = pl.cdiv(n_pix, tile)
    # Give megacore (v7x: 2 TensorCores) at least 2 parallel grid steps when
    # there is enough per-step work to make the split worthwhile.
    if n_b * n_tiles < 2 and n_pix >= 2048:
        tile = ((pl.cdiv(n_pix, 2) + 127) // 128) * 128
        n_tiles = pl.cdiv(n_pix, tile)

    # Scoped-VMEM budget: double-buffered I/O + resident weights + the
    # (hco, tile) intermediates, with 2x headroom, clamped to [32, 64] MiB.
    in_bytes = jnp.dtype(video_fea.dtype).itemsize
    io = (2 * (cv + cs + ct) * tile * in_bytes
          + 2 * cout * tile * jnp.dtype(out_dtype).itemsize)
    inter = 3 * hco * tile * 4
    wbytes = hco * (cv + cs + ct + 2) * 4
    vmem_limit = int(min(max(2 * (io + inter + wbytes), 32 << 20), 64 << 20))

    kernel = functools.partial(_mutan_kernel, heads=heads, cout=cout,
                               act_dtype=act_dtype)

    out = pl.pallas_call(
        kernel,
        out_shape=jax.ShapeDtypeStruct((n_b, cout, n_pix), out_dtype),
        grid_spec=pltpu.PrefetchScalarGridSpec(
            num_scalar_prefetch=0,
            grid=(n_b, n_tiles),
            in_specs=[
                pl.BlockSpec((1, cv, tile), lambda b, i: (b, 0, i)),
                pl.BlockSpec((1, cs, tile), lambda b, i: (b, 0, i)),
                pl.BlockSpec((1, ct, tile), lambda b, i: (b, 0, i)),
                pl.BlockSpec((hco, cv + cs), lambda b, i: (0, 0)),
                pl.BlockSpec((hco, 1), lambda b, i: (0, 0)),
                pl.BlockSpec((hco, ct), lambda b, i: (0, 0)),
                pl.BlockSpec((hco, 1), lambda b, i: (0, 0)),
            ],
            out_specs=pl.BlockSpec((1, cout, tile), lambda b, i: (b, 0, i)),
        ),
        compiler_params=pltpu.CompilerParams(
            dimension_semantics=("parallel", "parallel"),
            vmem_limit_bytes=vmem_limit),
    )(xv, xs, xt, wv_all, bv_all, wt_all, bt_all)

    if fold_batch:
        out = out.reshape(cout, B, hw).transpose(1, 0, 2)
    return out.reshape(B, cout, H, W)


def mutan_reference(video_fea, text_fea, spatial, params):
    """Pure-JAX f32 reference of the PyTorch forward (for verification)."""
    wv, bv, wt, bt = params["wv"], params["bv"], params["wt"], params["bt"]
    heads = wv.shape[0]
    xv = jnp.concatenate([video_fea, spatial], axis=1)
    acc = 0.0
    for h in range(heads):
        fv = jnp.tanh(jnp.einsum("bchw,co->bohw", xv, wv[h])
                      + bv[h][None, :, None, None])
        ft = jnp.tanh(jnp.einsum("bchw,co->bohw", text_fea, wt[h])
                      + bt[h][None, :, None, None])
        acc = acc + fv * ft
    y = jnp.tanh(acc)
    norm = jnp.sqrt(jnp.sum(y * y, axis=1, keepdims=True))
    return y / jnp.maximum(norm, 1e-12)


if __name__ == "__main__":
    # Small, module-consistent shapes.
    B, H, W = 2, 8, 8
    video_fea_dim, text_fea_dim, out_fea_dim, heads = 4, 6, 32, 5

    key = jax.random.PRNGKey(0)
    k = jax.random.split(key, 8)
    video_fea = jax.random.normal(k[0], (B, video_fea_dim, H, W), jnp.float32)
    text_fea = jax.random.normal(k[1], (B, text_fea_dim, H, W), jnp.float32)
    spatial = jax.random.normal(k[2], (B, 8, H, W), jnp.float32)

    # nn.Conv2d(Cin, Cout, 1, 1) weight (Cout, Cin, 1, 1) stored pre-transposed
    # as (heads, Cin, Cout); prepare_mutan_params re-lays it out ONCE.
    params = {
        "wv": 0.1 * jax.random.normal(k[3], (heads, video_fea_dim + 8, out_fea_dim), jnp.float32),
        "bv": 0.1 * jax.random.normal(k[4], (heads, out_fea_dim), jnp.float32),
        "wt": 0.1 * jax.random.normal(k[5], (heads, text_fea_dim, out_fea_dim), jnp.float32),
        "bt": 0.1 * jax.random.normal(k[6], (heads, out_fea_dim), jnp.float32),
    }
    prepared = prepare_mutan_params(params)

    out = mutan_pallas(video_fea, text_fea, spatial, prepared)
    out = jax.block_until_ready(out)

    ref = mutan_reference(video_fea, text_fea, spatial, params)
    assert out.shape == (B, out_fea_dim, H, W), out.shape
    # bf16 MXU operands (+ bf16 tanh chain on v6e/v7x) -> loosened tolerance
    # vs the f32 reference; the output is tanh-saturated and L2-normalized.
    max_err = float(jnp.max(jnp.abs(out - ref)))
    assert jnp.allclose(out, ref, atol=3e-2, rtol=0.0), max_err

    print("KERNEL_OK")
</pallas_src>

<mosaic_0001>
module attributes {stable_mosaic.version = 11 : i64} {
  func.func @_mutan_kernel(%arg0: i32, %arg1: i32, %arg2: memref<1x4x128xf32, #tpu.memory_space<vmem>>, %arg3: memref<1x8x128xf32, #tpu.memory_space<vmem>>, %arg4: memref<1x6x128xf32, #tpu.memory_space<vmem>>, %arg5: memref<160x12xbf16, #tpu.memory_space<vmem>>, %arg6: memref<160x1xf32, #tpu.memory_space<vmem>>, %arg7: memref<160x6xbf16, #tpu.memory_space<vmem>>, %arg8: memref<160x1xf32, #tpu.memory_space<vmem>>, %arg9: memref<1x32x128xf32, #tpu.memory_space<vmem>>) attributes {dimension_semantics = [#tpu.dimension_semantics<parallel>, #tpu.dimension_semantics<parallel>], iteration_bounds = array<i64: 1, 1>, scalar_prefetch = 0 : i64, scratch_operands = 0 : i64, tpu.core_type = #tpu.core_type<tc>, window_params = [{transform_indices = @transform_0, window_bounds = array<i64: 1, 4, 128>}, {transform_indices = @transform_1, window_bounds = array<i64: 1, 8, 128>}, {transform_indices = @transform_2, window_bounds = array<i64: 1, 6, 128>}, {pipeline_mode = #tpu.pipeline_mode<synchronous>, transform_indices = @transform_3, window_bounds = array<i64: 160, 12>}, {pipeline_mode = #tpu.pipeline_mode<synchronous>, transform_indices = @transform_4, window_bounds = array<i64: 160, 1>}, {pipeline_mode = #tpu.pipeline_mode<synchronous>, transform_indices = @transform_5, window_bounds = array<i64: 160, 6>}, {pipeline_mode = #tpu.pipeline_mode<synchronous>, transform_indices = @transform_6, window_bounds = array<i64: 160, 1>}, {transform_indices = @transform_7, window_bounds = array<i64: 1, 32, 128>}]} {
    %c0 = arith.constant 0 : index
    %c0_0 = arith.constant 0 : index
    %0 = vector.load %arg5[%c0, %c0_0] : memref<160x12xbf16, #tpu.memory_space<vmem>>, vector<160x12xbf16>
    %c0_1 = arith.constant 0 : index
    %c0_2 = arith.constant 0 : index
    %1 = vector.load %arg7[%c0_1, %c0_2] : memref<160x6xbf16, #tpu.memory_space<vmem>>, vector<160x6xbf16>
    %c0_3 = arith.constant 0 : index
    %c0_4 = arith.constant 0 : index
    %c0_5 = arith.constant 0 : index
    %2 = vector.load %arg2[%c0_3, %c0_4, %c0_5] : memref<1x4x128xf32, #tpu.memory_space<vmem>>, vector<1x4x128xf32>
    %3 = vector.shape_cast %2 : vector<1x4x128xf32> to vector<4x128xf32>
    %c0_6 = arith.constant 0 : index
    %c0_7 = arith.constant 0 : index
    %c0_8 = arith.constant 0 : index
    %4 = vector.load %arg3[%c0_6, %c0_7, %c0_8] : memref<1x8x128xf32, #tpu.memory_space<vmem>>, vector<1x8x128xf32>
    %5 = vector.shape_cast %4 : vector<1x8x128xf32> to vector<8x128xf32>
    %6 = tpu.concatenate %3, %5 in 0 : vector<4x128xf32>, vector<8x128xf32> -> vector<12x128xf32>
    %7 = arith.truncf %6 : vector<12x128xf32> to vector<12x128xbf16>
    %c0_9 = arith.constant 0 : index
    %c0_10 = arith.constant 0 : index
    %c0_11 = arith.constant 0 : index
    %8 = vector.load %arg4[%c0_9, %c0_10, %c0_11] : memref<1x6x128xf32, #tpu.memory_space<vmem>>, vector<1x6x128xf32>
    %9 = vector.shape_cast %8 : vector<1x6x128xf32> to vector<6x128xf32>
    %10 = arith.truncf %9 : vector<6x128xf32> to vector<6x128xbf16>
    %cst = arith.constant dense<0.000000e+00> : vector<160x128xf32>
    %11 = tpu.matmul %0, %7, %cst {dimension_numbers = #tpu.dot_dimension_numbers<[1], [0], [0], [1], [0, 0, 1, 1], [], []>} : vector<160x12xbf16>, vector<12x128xbf16>, vector<160x128xf32> -> vector<160x128xf32>
    %c0_12 = arith.constant 0 : index
    %c0_13 = arith.constant 0 : index
    %12 = vector.load %arg6[%c0_12, %c0_13] : memref<160x1xf32, #tpu.memory_space<vmem>>, vector<160x1xf32>
    %13 = vector.broadcast %12 : vector<160x1xf32> to vector<160x128xf32>
    %14 = arith.addf %11, %13 : vector<160x128xf32>
    %cst_14 = arith.constant dense<0.000000e+00> : vector<160x128xf32>
    %15 = tpu.matmul %1, %10, %cst_14 {dimension_numbers = #tpu.dot_dimension_numbers<[1], [0], [0], [1], [0, 0, 1, 1], [], []>} : vector<160x6xbf16>, vector<6x128xbf16>, vector<160x128xf32> -> vector<160x128xf32>
    %c0_15 = arith.constant 0 : index
    %c0_16 = arith.constant 0 : index
    %16 = vector.load %arg8[%c0_15, %c0_16] : memref<160x1xf32, #tpu.memory_space<vmem>>, vector<160x1xf32>
    %17 = vector.broadcast %16 : vector<160x1xf32> to vector<160x128xf32>
    %18 = arith.addf %15, %17 : vector<160x128xf32>
    %19 = arith.truncf %14 : vector<160x128xf32> to vector<160x128xbf16>
    %20 = math.tanh %19 : vector<160x128xbf16>
    %21 = arith.truncf %18 : vector<160x128xf32> to vector<160x128xbf16>
    %22 = math.tanh %21 : vector<160x128xbf16>
    %23 = arith.mulf %20, %22 : vector<160x128xbf16>
    %24 = vector.extract_strided_slice %23 {offsets = [0, 0], sizes = [32, 128], strides = [1, 1]} : vector<160x128xbf16> to vector<32x128xbf16>
    %25 = vector.extract_strided_slice %23 {offsets = [32, 0], sizes = [32, 128], strides = [1, 1]} : vector<160x128xbf16> to vector<32x128xbf16>
    %26 = arith.addf %24, %25 : vector<32x128xbf16>
    %27 = vector.extract_strided_slice %23 {offsets = [64, 0], sizes = [32, 128], strides = [1, 1]} : vector<160x128xbf16> to vector<32x128xbf16>
    %28 = arith.addf %26, %27 : vector<32x128xbf16>
    %29 = vector.extract_strided_slice %23 {offsets = [96, 0], sizes = [32, 128], strides = [1, 1]} : vector<160x128xbf16> to vector<32x128xbf16>
    %30 = arith.addf %28, %29 : vector<32x128xbf16>
    %31 = vector.extract_strided_slice %23 {offsets = [128, 0], sizes = [32, 128], strides = [1, 1]} : vector<160x128xbf16> to vector<32x128xbf16>
    %32 = arith.addf %30, %31 : vector<32x128xbf16>
    %33 = math.tanh %32 : vector<32x128xbf16>
    %34 = arith.extf %33 : vector<32x128xbf16> to vector<32x128xf32>
    %35 = arith.mulf %34, %34 : vector<32x128xf32>
    %cst_17 = arith.constant dense<0.000000e+00> : vector<128xf32>
    %36 = vector.multi_reduction <add>, %35, %cst_17 [0] : vector<32x128xf32> to vector<128xf32>
    %37 = vector.shape_cast %36 : vector<128xf32> to vector<1x128xf32>
    %cst_18 = arith.constant 1.000000e-24 : f32
    %38 = vector.broadcast %cst_18 : f32 to vector<1x128xf32>
    %39 = arith.maximumf %37, %38 : vector<1x128xf32>
    %40 = math.rsqrt %39 : vector<1x128xf32>
    %41 = vector.broadcast %40 : vector<1x128xf32> to vector<32x128xf32>
    %42 = arith.mulf %34, %41 : vector<32x128xf32>
    %c0_19 = arith.constant 0 : index
    %c0_20 = arith.constant 0 : index
    %c0_21 = arith.constant 0 : index
    %43 = vector.load %arg9[%c0_19, %c0_20, %c0_21] : memref<1x32x128xf32, #tpu.memory_space<vmem>>, vector<1x32x128xf32>
    %44 = vector.shape_cast %43 : vector<1x32x128xf32> to vector<32x128xf32>
    %45 = vector.shape_cast %42 : vector<32x128xf32> to vector<1x32x128xf32>
    tpu.vector_store %arg9[%c0_19, %c0_20, %c0_21], %45 {strides = array<i32>} : memref<1x32x128xf32, #tpu.memory_space<vmem>>, vector<1x32x128xf32>,
    return
  }
  func.func @transform_0(%arg0: i32, %arg1: i32) -> (i32, i32, i32) {
    %c0_i32 = arith.constant 0 : i32
    %c0_i32_0 = arith.constant 0 : i32
    return %arg0, %c0_i32, %arg1 : i32, i32, i32
  }
  func.func @transform_1(%arg0: i32, %arg1: i32) -> (i32, i32, i32) {
    %c0_i32 = arith.constant 0 : i32
    %c0_i32_0 = arith.constant 0 : i32
    return %arg0, %c0_i32, %arg1 : i32, i32, i32
  }
  func.func @transform_2(%arg0: i32, %arg1: i32) -> (i32, i32, i32) {
    %c0_i32 = arith.constant 0 : i32
    %c0_i32_0 = arith.constant 0 : i32
    return %arg0, %c0_i32, %arg1 : i32, i32, i32
  }
  func.func @transform_3(%arg0: i32, %arg1: i32) -> (i32, i32) {
    %c0_i32 = arith.constant 0 : i32
    %c0_i32_0 = arith.constant 0 : i32
    %c0_i32_1 = arith.constant 0 : i32
    return %c0_i32, %c0_i32_0 : i32, i32
  }
  func.func @transform_4(%arg0: i32, %arg1: i32) -> (i32, i32) {
    %c0_i32 = arith.constant 0 : i32
    %c0_i32_0 = arith.constant 0 : i32
    %c0_i32_1 = arith.constant 0 : i32
    return %c0_i32, %c0_i32_0 : i32, i32
  }
  func.func @transform_5(%arg0: i32, %arg1: i32) -> (i32, i32) {
    %c0_i32 = arith.constant 0 : i32
    %c0_i32_0 = arith.constant 0 : i32
    %c0_i32_1 = arith.constant 0 : i32
    return %c0_i32, %c0_i32_0 : i32, i32
  }
  func.func @transform_6(%arg0: i32, %arg1: i32) -> (i32, i32) {
    %c0_i32 = arith.constant 0 : i32
    %c0_i32_0 = arith.constant 0 : i32
    %c0_i32_1 = arith.constant 0 : i32
    return %c0_i32, %c0_i32_0 : i32, i32
  }
  func.func @transform_7(%arg0: i32, %arg1: i32) -> (i32, i32, i32) {
    %c0_i32 = arith.constant 0 : i32
    %c0_i32_0 = arith.constant 0 : i32
    return %arg0, %c0_i32, %arg1 : i32, i32, i32
  }
}

</mosaic_0001>

<bundles_post_ra>
// kernel: tpu_custom_call.1
= control target key start
LH: loop header
LB: loop body
LE: loop exit
PB: predicated region body
PF: predicated region fallthrough
CT: control target
= control target key end

     0   :  { %vm597_vm0 = vcmask 1042432   ;;  %v1021_v3 = vmov 0   ;;  %vm73_vm1 = vcmask 1043456   ;;  %vm566_vm2 = vcmask 48128   ;;  %s1337_s0 = inlined_call_operand.vmem [shape: f32[1,4,128], index: 0, kind: input, shape index: {}]   ;;  %s1338_s1 = inlined_call_operand.vmem [shape: f32[1,8,128], index: 1, kind: input, shape index: {}]   ;;  %s1339_s2 = inlined_call_operand.vmem [shape: f32[1,6,128], index: 2, kind: input, shape index: {}]   ;;  %s1340_s3 = inlined_call_operand.vmem [shape: bf16[160,12], index: 3, kind: input, shape index: {}]   ;;  %s1341_s4 = inlined_call_operand.vmem [shape: f32[160,1], index: 4, kind: input, shape index: {}]   ;;  %s1342_s5 = inlined_call_operand.vmem [shape: bf16[160,6], index: 5, kind: input, shape index: {}]   ;;  %s1343_s6 = inlined_call_operand.vmem [shape: f32[160,1], index: 6, kind: input, shape index: {}]   ;;  %s1344_s7 = inlined_call_operand.hbm [shape: f32[1,32,128], index: 7, kind: output, shape index: {}]  }
   0x1   :  { %v80_v0 = vld [vmem:[%s1341_s4 + $0x10] sm:$0xff]  ;;  %v78_v1 = vld [vmem:[%s1341_s4] sm:$0xff]  ;;  %930 = vset.pattern.permute.xlu1 %v1021_v3  ;;  %929 = vset.pattern.permute.xlu0 %v1021_v3  ;;  %v81_v5 = vld [vmem:[%s1341_s4 + $0x18] sm:$0xff]  ;;  %vm279_vm3 = vcmask 1045504   ;;  %vm248_vm4 = vcmask 97280  }
   0x2   :  { %v76_v2 = vld [vmem:[%s1339_s2] sm:$0x3f]  ;;  %v79_v6 = vld [vmem:[%s1341_s4 + $0x8] sm:$0xff]  ;;  %110 = vperm.xlu1 %930, %v80_v0   ;;  %100 = vperm.xlu0 %929, %v78_v1   ;;  %v935_v20 = vld [vmem:[%s1342_s5 + $0x10] sm:$0xff]  }
   0x3   :  { %v77_v4 = vpack.c.bf16 %v76_v2, %v76_v2  ;;  %v68_v7 = vld [vmem:[%s1337_s0] sm:$0xf]  ;;  %v932_v12 = vld [vmem:[%s1342_s5 + $0x8] sm:$0xff]   ;;  %v937_v23 = vld [vmem:[%s1340_s3 + $0x10] sm:$0xff]  }
   0x4   :  { %v69_v8 = vld [vmem:[%s1338_s1] sm:$0xff]  ;;  %v83_v16 = vld [vmem:[%s1341_s4 + $0x28] sm:$0xff]  ;;  %v936_v24 = vld [vmem:[%s1342_s5 + $0x18] sm:$0xff]  }
   0x5   :  { %924 = vmatprep.subr.msk.bf16.mxu1 %vm597_vm0, %v77_v4  ;;  %v599_v9 = vsel %vm597_vm0, %v77_v4, 0  ;;  %v71_v10 = vrot.slane %v69_v8, 4  ;;  %v931_v11 = vld [vmem:[%s1342_s5] sm:$0xff]   ;;  %v934_v18 = vld [vmem:[%s1340_s3 + $0x8] sm:$0xff]   ;;  %v938_v28 = vld [vmem:[%s1340_s3 + $0x18] sm:$0xff]  }
   0x6   :  { %902 = vmatpush3.bf16.msra.mxu1 %v599_v9  ;;  %903 = vmatprep.mubr.msk.bf16.mxu1 %vm566_vm2, %v931_v11  ;;  %v933_v14 = vld [vmem:[%s1340_s3] sm:$0xff]   ;;  %v397_v21 = vld [vmem:[%s1343_s6 + $0x8] sm:$0xff]  ;;  %v85_v29 = vld [vmem:[%s1341_s4 + $0x38] sm:$0xff] }
   0x7   :  { %v74_v13 = vsel %vm73_vm1, %v68_v7, %v71_v10  ;;  %115 = vperm.xlu1 %930, %v81_v5   ;;  %105 = vperm.xlu0 %929, %v79_v6   ;;  %v82_v17 = vld [vmem:[%s1341_s4 + $0x20] sm:$0xff]  ;;  %v401_v26 = vld [vmem:[%s1343_s6 + $0x28] sm:$0xff]  ;;  %v84_v31 = vld [vmem:[%s1341_s4 + $0x30] sm:$0xff] }
   0x8   :  { %v75_v15 = vpack.c.bf16 %v71_v10, %v74_v13  ;;  %881 = vmatprep.mubr.msk.bf16.mxu0 %vm248_vm4, %v933_v14  ;;  %v396_v22 = vld [vmem:[%s1343_s6] sm:$0xff]  ;;  %v940_v32 = vld [vmem:[%s1342_s5 + $0x28] sm:$0xff]   ;;  %v943_v33 = vld [vmem:[%s1342_s5 + $0x30] sm:$0xff]  }
   0x9   :  { %904 = vmatmul.mubr.msk.bf16.vlgmr.msra.gmra.mrb[0].mxu1 %vm566_vm2, %v932_v12  ;;  %v939_v25 = vld [vmem:[%s1342_s5 + $0x20] sm:$0xff]   ;;  %v87_v34 = vld [vmem:[%s1341_s4 + $0x48] sm:$0xff]  ;;  %v945_v37 = vld [vmem:[%s1340_s3 + $0x30] sm:$0xff]  }
   0xa   :  { %923 = vmatprep.subr.msk.bf16.mxu0 %vm279_vm3, %v75_v15  ;;  %v281_v19 = vsel %vm279_vm3, %v75_v15, 0  ;;  %907 = vmatprep.mubr.msk.bf16.mxu1 %vm566_vm2, %v935_v20  ;;  %v400_v27 = vld [vmem:[%s1343_s6 + $0x20] sm:$0xff]  ;;  %v942_v36 = vld [vmem:[%s1340_s3 + $0x28] sm:$0xff]   ;;  %v399_v38 = vld [vmem:[%s1343_s6 + $0x18] sm:$0xff] }
   0xb   :  { %880 = vmatpush3.bf16.msra.mxu0 %v281_v19  ;;  %125 = vperm.xlu1 %930, %v83_v16   ;;  %v941_v30 = vld [vmem:[%s1340_s3 + $0x20] sm:$0xff]   ;;  %v398_v39 = vld [vmem:[%s1343_s6 + $0x10] sm:$0xff]  ;;  %v944_v40 = vld [vmem:[%s1342_s5 + $0x38] sm:$0xff]  }
   0xc   :  { %120 = vperm.xlu0 %929, %v82_v17   ;;  %v86_v35 = vld [vmem:[%s1341_s4 + $0x40] sm:$0xff]  ;;  %v403_v42 = vld [vmem:[%s1343_s6 + $0x38] sm:$0xff]  ;;  %v402_v43 = vld [vmem:[%s1343_s6 + $0x30] sm:$0xff] }
   0xd   :  { %v947_v41 = vld [vmem:[%s1342_s5 + $0x40] sm:$0xff]   ;;  %v946_v44 = vld [vmem:[%s1340_s3 + $0x38] sm:$0xff]  }
   0xe   :  { %882 = vmatmul.mubr.msk.bf16.vlgmr.msra.gmra.mrb[0].mxu0 %vm248_vm4, %v934_v18  ;;  %v949_v45 = vld [vmem:[%s1340_s3 + $0x40] sm:$0xff]  }
   0xf   :  { %885 = vmatprep.mubr.msk.bf16.mxu0 %vm248_vm4, %v937_v23  ;;  %423 = vperm.xlu1 %930, %v397_v21  }
  0x10   :  { %418 = vperm.xlu0 %929, %v396_v22  }
  0x11   :  { %908 = vmatmul.mubr.msk.bf16.gmra.mrb[4].mxu1 %vm566_vm2, %v936_v24 }
  0x12   :  { %911 = vmatprep.mubr.msk.bf16.mxu1 %vm566_vm2, %v939_v25 }
  0x13   :  { %443 = vperm.xlu1 %930, %v401_v26  }
  0x14   :  { %438 = vperm.xlu0 %929, %v400_v27  }
  0x16   :  { %886 = vmatmul.mubr.msk.bf16.gmra.mrb[4].mxu0 %vm248_vm4, %v938_v28 }
  0x17   :  { %889 = vmatprep.mubr.msk.bf16.mxu0 %vm248_vm4, %v941_v30  ;;  %135 = vperm.xlu1 %930, %v85_v29  }
  0x18   :  { %130 = vperm.xlu0 %929, %v84_v31  }
  0x19   :  { %912 = vmatmul.mubr.msk.bf16.gmra.mrb[8].mxu1 %vm566_vm2, %v940_v32 }
  0x1a   :  { %915 = vmatprep.mubr.msk.bf16.mxu1 %vm566_vm2, %v943_v33 }
  0x1b   :  { %145 = vperm.xlu1 %930, %v87_v34  }
  0x1c   :  { %140 = vperm.xlu0 %929, %v86_v35  }
  0x1e   :  { %890 = vmatmul.mubr.msk.bf16.gmra.mrb[8].mxu0 %vm248_vm4, %v942_v36 }
  0x1f   :  { %893 = vmatprep.mubr.msk.bf16.mxu0 %vm248_vm4, %v945_v37  ;;  %433 = vperm.xlu1 %930, %v399_v38  }
  0x20   :  { %428 = vperm.xlu0 %929, %v398_v39  }
  0x21   :  { %916 = vmatmul.mubr.msk.bf16.gmra.mrb[12].mxu1 %vm566_vm2, %v944_v40 }
  0x22   :  { %919 = vmatprep.mubr.msk.bf16.mxu1 %vm566_vm2, %v947_v41 }
  0x23   :  { %453 = vperm.xlu1 %930, %v403_v42  }
  0x24   :  { %448 = vperm.xlu0 %929, %v402_v43  }
  0x25   :  { %12 = vsyncpa [#allocation3], 0  ;;  %v405_v46 = vld [vmem:[%s1343_s6 + $0x48] sm:$0xff]  ;;  %v404_v47 = vld [vmem:[%s1343_s6 + $0x40] sm:$0xff] }
  0x26   :  { %v948_v48 = vld [vmem:[%s1342_s5 + $0x48] sm:$0xff]   ;;  %894 = vmatmul.mubr.msk.bf16.gmra.mrb[12].mxu0 %vm248_vm4, %v946_v44  ;;  %v89_v49 = vld [vmem:[%s1341_s4 + $0x58] sm:$0xff]  ;;  %v88_v50 = vld [vmem:[%s1341_s4 + $0x50] sm:$0xff] }
  0x27   :  { %897 = vmatprep.mubr.msk.bf16.mxu0 %vm248_vm4, %v949_v45  ;;  %463 = vperm.xlu1 %930, %v405_v46   ;;  %v950_v51 = vld [vmem:[%s1340_s3 + $0x48] sm:$0xff]   ;;  %v90_v53 = vld [vmem:[%s1341_s4 + $0x60] sm:$0xff]  ;;  %v407_v54 = vld [vmem:[%s1343_s6 + $0x58] sm:$0xff] }
  0x28   :  { %458 = vperm.xlu0 %929, %v404_v47   ;;  %v91_v52 = vld [vmem:[%s1341_s4 + $0x68] sm:$0xff]  ;;  %v406_v55 = vld [vmem:[%s1343_s6 + $0x50] sm:$0xff]  ;;  %v408_v57 = vld [vmem:[%s1343_s6 + $0x60] sm:$0xff] }
  0x29   :  { %920 = vmatmul.mubr.msk.bf16.gmra.mrb[16].mxu1 %vm566_vm2, %v948_v48  ;;  %v409_v56 = vld [vmem:[%s1343_s6 + $0x68] sm:$0xff]  ;;  %v93_v58 = vld [vmem:[%s1341_s4 + $0x78] sm:$0xff]  ;;  %v92_v59 = vld [vmem:[%s1341_s4 + $0x70] sm:$0xff] }
  0x2a   :  { %v95_v60 = vld [vmem:[%s1341_s4 + $0x88] sm:$0xff]  ;;  %v94_v61 = vld [vmem:[%s1341_s4 + $0x80] sm:$0xff]  ;;  %v411_v62 = vld [vmem:[%s1343_s6 + $0x78] sm:$0xff] }
  0x2b   :  { %155 = vperm.xlu1 %930, %v89_v49   ;;  %v410_v63 = vld [vmem:[%s1343_s6 + $0x70] sm:$0xff]  ;;  %v413_v0 = vld [vmem:[%s1343_s6 + $0x88] sm:$0xff]  ;;  %v412_v1 = vld [vmem:[%s1343_s6 + $0x80] sm:$0xff] }
  0x2c   :  { %150 = vperm.xlu0 %929, %v88_v50   ;;  %v97_v2 = vld [vmem:[%s1341_s4 + $0x98] sm:$0xff]  ;;  %v96_v3 = vld [vmem:[%s1341_s4 + $0x90] sm:$0xff]  ;;  %s1022_s4 = smov [#allocation2]  }
  0x2d   :  { %v415_v4 = vld [vmem:[%s1343_s6 + $0x98] sm:$0xff]  ;;  %v414_v5 = vld [vmem:[%s1343_s6 + $0x90] sm:$0xff]  ;;  %s806_s6 = sshll.u32 %s1022_s4, 4  ;;  %s807_s6 = int_to_ptr.vmem [resolvable:$true] %s806_s6 }
  0x2e   :  { %898 = vmatmul.mubr.msk.bf16.gmra.mrb[16].mxu0 %vm248_vm4, %v950_v51  ;;  %s997_s0 = scalar_lea.vmem %s807_s6, 512  ;;  %p1002_p1 = scmp.lt.s32.totalorder %s807_s6, %s807_s6 }
  0x2f   :  { %165 = vperm.xlu1 %930, %v91_v52   ;;  %p998_p0 = scmp.ne.s32.totalorder %s807_s6, %s997_s0  ;;  %p1003_p2 = scmp.lt.s32.totalorder %s997_s0, %s997_s0 }
  0x30   :  { %160 = vperm.xlu0 %929, %v90_v53  }
  0x31   :  { %p1004_p3 = por %p1003_p2, %p1002_p1 }
  0x33   :  { %473 = vperm.xlu1 %930, %v407_v54   ;;  %p1005_p4 = pnand %p1004_p3, %p998_p0 }
  0x34   :  { %468 = vperm.xlu0 %929, %v406_v55  }
  0x37   :  { %483 = vperm.xlu1 %930, %v409_v56  }
  0x38   :  { %478 = vperm.xlu0 %929, %v408_v57  }
  0x3b   :  { %175 = vperm.xlu1 %930, %v93_v58  }
  0x3c   :  { %170 = vperm.xlu0 %929, %v92_v59  }
  0x3f   :  { %185 = vperm.xlu1 %930, %v95_v60  }
  0x40   :  { %180 = vperm.xlu0 %929, %v94_v61  }
  0x43   :  { %493 = vperm.xlu1 %930, %v411_v62  }
  0x44   :  { %488 = vperm.xlu0 %929, %v410_v63  }
  0x47   :  { %503 = vperm.xlu1 %930, %v413_v0  }
  0x48   :  { %498 = vperm.xlu0 %929, %v412_v1  }
  0x4b   :  { %195 = vperm.xlu1 %930, %v97_v2  }
  0x4c   :  { %190 = vperm.xlu0 %929, %v96_v3  }
  0x4f   :  { %513 = vperm.xlu1 %930, %v415_v4  }
  0x50   :  { %508 = vperm.xlu0 %929, %v414_v5  }
  0x81   :  { %v111_v6 = vpop.permute.xlu1 %110  ;;  %v101_v7 = vpop.permute.xlu0 %100 }
  0x86   :  { %v116_v8 = vpop.permute.xlu1 %115  ;;  %v106_v9 = vpop.permute.xlu0 %105 }
  0x8a   :  { %v1274_v10 = vpop.permute.xlu1 %125 }
  0x8b   :  { %v1276_v11 = vpop.permute.xlu0 %120 }
  0x8e   :  { %v424_v12 = vpop.permute.xlu1 %423 }
  0x8f   :  { %v419_v13 = vpop.permute.xlu0 %418 }
  0x92   :  { %v444_v14 = vpop.permute.xlu1 %443 }
  0x93   :  { %v439_v15 = vpop.permute.xlu0 %438 }
  0x96   :  { %v136_v16 = vpop.permute.xlu1 %135 }
  0x97   :  { %v131_v17 = vpop.permute.xlu0 %130 }
  0x9a   :  { %v1278_v18 = vpop.permute.xlu1 %145 }
  0x9b   :  { %v1280_v19 = vpop.permute.xlu0 %140 }
  0x9e   :  { %v434_v20 = vpop.permute.xlu1 %433 }
  0x9f   :  { %v429_v21 = vpop.permute.xlu0 %428 }
  0xa2   :  { %v454_v22 = vpop.permute.xlu1 %453 }
  0xa3   :  { %v449_v23 = vpop.permute.xlu0 %448 }
  0xa6   :  { %v1282_v24 = vpop.permute.xlu1 %463 }
  0xa7   :  { %v1284_v25 = vpop.permute.xlu0 %458 }
  0xaa   :  { %v1286_v26 = vpop.permute.xlu1 %155 }
  0xab   :  { %v1288_v27 = vpop.permute.xlu0 %150 }
  0xae   :  { %v1290_v28 = vpop.permute.xlu1 %165 }
  0xaf   :  { %v1292_v29 = vpop.permute.xlu0 %160 }
  0xb2   :  { %v474_v30 = vpop.permute.xlu1 %473 }
  0xb3   :  { %v469_v31 = vpop.permute.xlu0 %468 }
  0xb6   :  { %v1294_v32 = vpop.permute.xlu1 %483 }
  0xb7   :  { %v1296_v33 = vpop.permute.xlu0 %478 }
  0xba   :  { %v1298_v35 = vpop.permute.xlu1 %175 }
  0xbb   :  { %v1300_v38 = vpop.permute.xlu0 %170 }
  0xbe   :  { %v1302_v48 = vpop.permute.xlu1 %185 }
  0xbf   :  { %v1304_v54 = vpop.permute.xlu0 %180 }
  0xc2   :  { %v494_v4 = vpop.permute.xlu1 %493 }
  0xdc   :  { %v905_v34 = vpop.f32.mrb[0].mxu1 }
  0xdd   :  { %v635_v36 = vpop.f32.mrb[1].mxu1  ;;  %v644_v39 = vadd.f32 %v905_v34, %v429_v21 }
  0xde   :  { %v906_v37 = vpop.f32.mrb[2].mxu1  ;;  %v636_v42 = vadd.f32 %v635_v36, %v419_v13 }
  0xdf   :  { %v647_v40 = vadd.f32 %v906_v37, %v434_v20  ;;  %v638_v41 = vpop.f32.mrb[3].mxu1 }
  0xe0   :  { %v639_v43 = vadd.f32 %v638_v41, %v424_v12  ;;  %v1310_v41 = vpop.permute.xlu1 %503 }
  0xe1   :  { %v735_v44 = vpack.c.bf16 %v647_v40, %v644_v39  ;;  %v883_v45 = vpop.f32.mrb[0].mxu0 }
  0xe2   :  { %v734_v46 = vpack.c.bf16 %v639_v43, %v636_v42  ;;  %v317_v47 = vpop.f32.mrb[1].mxu0  ;;  %v326_v50 = vadd.f32 %v883_v45, %v111_v6 }
  0xe3   :  { %v884_v49 = vpop.f32.mrb[2].mxu0  ;;  %v318_v55 = vadd.f32 %v317_v47, %v101_v7  ;;  %951 = vtanh.bf16 %v735_v44  ;;  %v489_v7 = vpop.permute.xlu0 %488 }
  0xe4   :  { %v329_v51 = vadd.f32 %v884_v49, %v116_v8  ;;  %v320_v52 = vpop.f32.mrb[3].mxu0  ;;  %v909_v53 = vpop.f32.mrb[4].mxu1  ;;  %953 = vtanh.bf16 %v734_v46 }
  0xe5   :  { %v321_v56 = vadd.f32 %v320_v52, %v106_v9  ;;  %v651_v57 = vpop.f32.mrb[5].mxu1  ;;  %v660_v61 = vadd.f32 %v909_v53, %v449_v23 }
  0xe6   :  { %v715_v58 = vpack.c.bf16 %v329_v51, %v326_v50  ;;  %v910_v59 = vpop.f32.mrb[6].mxu1  ;;  %v652_v0 = vadd.f32 %v651_v57, %v439_v15 }
  0xe7   :  { %v714_v60 = vpack.c.bf16 %v321_v56, %v318_v55  ;;  %v663_v62 = vadd.f32 %v910_v59, %v454_v22  ;;  %v654_v63 = vpop.f32.mrb[7].mxu1  ;;  %v499_v43 = vpop.permute.xlu0 %498 }
  0xe8   :  { %955 = vtanh.bf16 %v715_v58  ;;  %v655_v1 = vadd.f32 %v654_v63, %v444_v14  ;;  %v196_v58 = vpop.permute.xlu1 %195 }
  0xe9   :  { %957 = vtanh.bf16 %v714_v60  ;;  %v737_v2 = vpack.c.bf16 %v663_v62, %v660_v61  ;;  %v887_v3 = vpop.f32.mrb[4].mxu0 }
  0xea   :  { %v736_v5 = vpack.c.bf16 %v655_v1, %v652_v0  ;;  %v333_v6 = vpop.f32.mrb[5].mxu0  ;;  %v342_v9 = vadd.f32 %v887_v3, %v131_v17 }
  0xeb   :  { %v888_v8 = vpop.f32.mrb[6].mxu0  ;;  %v334_v21 = vadd.f32 %v333_v6, %v1276_v11  ;;  %959 = vtanh.bf16 %v737_v2 }
  0xec   :  { %v345_v12 = vadd.f32 %v888_v8, %v136_v16  ;;  %v336_v13 = vpop.f32.mrb[7].mxu0  ;;  %v913_v20 = vpop.f32.mrb[8].mxu1  ;;  %961 = vtanh.bf16 %v736_v5 }
  0xed   :  { %v337_v22 = vadd.f32 %v336_v13, %v1274_v10  ;;  %v667_v23 = vpop.f32.mrb[9].mxu1  ;;  %v676_v36 = vadd.f32 %v913_v20, %v469_v31 }
  0xee   :  { %v717_v15 = vpack.c.bf16 %v345_v12, %v342_v9  ;;  %v914_v14 = vpop.f32.mrb[10].mxu1  ;;  %v668_v40 = vadd.f32 %v667_v23, %v1284_v25  ;;  %v952_v17 = vpop.eup %951 }
  0xef   :  { %v716_v34 = vpack.c.bf16 %v337_v22, %v334_v21  ;;  %v679_v37 = vadd.f32 %v914_v14, %v474_v30  ;;  %v670_v39 = vpop.f32.mrb[11].mxu1  ;;  %v954_v42 = vpop.eup %953 }
  0xf0   :  { %963 = vtanh.bf16 %v717_v15  ;;  %v671_v16 = vadd.f32 %v670_v39, %v1282_v24 }
  0xf1   :  { %965 = vtanh.bf16 %v716_v34  ;;  %v739_v11 = vpack.c.bf16 %v679_v37, %v676_v36  ;;  %v891_v10 = vpop.f32.mrb[8].mxu0 }
  0xf2   :  { %v738_v44 = vpack.c.bf16 %v671_v16, %v668_v40  ;;  %v349_v45 = vpop.f32.mrb[9].mxu0  ;;  %v358_v49 = vadd.f32 %v891_v10, %v1288_v27  ;;  %v191_v27 = vpop.permute.xlu0 %190 }
  0xf3   :  { %v956_v46 = vpop.eup %955  ;;  %v892_v47 = vpop.f32.mrb[10].mxu0  ;;  %v350_v52 = vadd.f32 %v349_v45, %v1280_v19  ;;  %967 = vtanh.bf16 %v739_v11 }
  0xf4   :  { %v958_v31 = vpop.eup %957  ;;  %v755_v30 = vmul.bf16 %v956_v46, %v952_v17  ;;  %v361_v25 = vadd.f32 %v892_v47, %v1286_v26  ;;  %v352_v50 = vpop.f32.mrb[11].mxu0  ;;  %969 = vtanh.bf16 %v738_v44 }
  0xf5   :  { %v917_v24 = vpop.f32.mrb[12].mxu1  ;;  %v754_v51 = vmul.bf16 %v958_v31, %v954_v42  ;;  %v353_v53 = vadd.f32 %v352_v50, %v1278_v18 }
  0xf6   :  { %v683_v55 = vpop.f32.mrb[13].mxu1  ;;  %v719_v56 = vpack.c.bf16 %v361_v25, %v358_v49  ;;  %v692_v60 = vadd.f32 %v917_v24, %v489_v7  ;;  %v960_v0 = vpop.eup %959 }
  0xf7   :  { %v918_v57 = vpop.f32.mrb[14].mxu1  ;;  %v718_v59 = vpack.c.bf16 %v353_v53, %v350_v52  ;;  %v684_v26 = vadd.f32 %v683_v55, %v1296_v33  ;;  %v962_v1 = vpop.eup %961 }
  0xf8   :  { %v695_v61 = vadd.f32 %v918_v57, %v494_v4  ;;  %v686_v62 = vpop.f32.mrb[15].mxu1  ;;  %971 = vtanh.bf16 %v719_v56  ;;  %v514_v33 = vpop.permute.xlu1 %513 }
  0xf9   :  { %v687_v63 = vadd.f32 %v686_v62, %v1294_v32  ;;  %973 = vtanh.bf16 %v718_v59  ;;  %v895_v18 = vpop.f32.mrb[12].mxu0  ;;  %v509_v23 = vpop.permute.xlu0 %508 }
  0xfa   :  { %v741_v19 = vpack.c.bf16 %v695_v61, %v692_v60  ;;  %v365_v3 = vpop.f32.mrb[13].mxu0  ;;  %v374_v4 = vadd.f32 %v895_v18, %v1300_v38 }
  0xfb   :  { %v740_v2 = vpack.c.bf16 %v687_v63, %v684_v26  ;;  %v964_v5 = vpop.eup %963  ;;  %v896_v6 = vpop.f32.mrb[14].mxu0  ;;  %v366_v32 = vadd.f32 %v365_v3, %v1292_v29 }
  0xfc   :  { %v966_v8 = vpop.eup %965  ;;  %v757_v9 = vmul.bf16 %v964_v5, %v960_v0  ;;  %v377_v7 = vadd.f32 %v896_v6, %v1298_v35  ;;  %v368_v12 = vpop.f32.mrb[15].mxu0  ;;  %975 = vtanh.bf16 %v741_v19 }
  0xfd   :  { %v921_v13 = vpop.f32.mrb[16].mxu1  ;;  %v756_v20 = vmul.bf16 %v966_v8, %v962_v1  ;;  %v369_v21 = vadd.f32 %v368_v12, %v1290_v28  ;;  %977 = vtanh.bf16 %v740_v2 }
  0xfe   :  { %v699_v22 = vpop.f32.mrb[17].mxu1  ;;  %v765_v15 = vadd.bf16 %v757_v9, %v755_v30  ;;  %v721_v14 = vpack.c.bf16 %v377_v7, %v374_v4  ;;  %v708_v38 = vadd.f32 %v921_v13, %v509_v23  ;;  %v968_v17 = vpop.eup %967 }
  0xff   :  { %v922_v34 = vpop.f32.mrb[18].mxu1  ;;  %v764_v36 = vadd.bf16 %v756_v20, %v754_v51  ;;  %v720_v37 = vpack.c.bf16 %v369_v21, %v366_v32  ;;  %v700_v40 = vadd.f32 %v699_v22, %v499_v43  ;;  %v970_v28 = vpop.eup %969 }
 0x100   :  { %v711_v39 = vadd.f32 %v922_v34, %v514_v33  ;;  %v702_v35 = vpop.f32.mrb[19].mxu1  ;;  %979 = vtanh.bf16 %v721_v14 }
 0x101   :  { %v703_v16 = vadd.f32 %v702_v35, %v1310_v41  ;;  %981 = vtanh.bf16 %v720_v37  ;;  %v899_v11 = vpop.f32.mrb[16].mxu0 }
 0x102   :  { %v743_v29 = vpack.c.bf16 %v711_v39, %v708_v38  ;;  %v381_v42 = vpop.f32.mrb[17].mxu0  ;;  %v390_v31 = vadd.f32 %v899_v11, %v191_v27 }
 0x103   :  { %v742_v10 = vpack.c.bf16 %v703_v16, %v700_v40  ;;  %v972_v44 = vpop.eup %971  ;;  %v900_v45 = vpop.f32.mrb[18].mxu0  ;;  %v382_v50 = vadd.f32 %v381_v42, %v1304_v54 }
 0x104   :  { %v974_v46 = vpop.eup %973  ;;  %v759_v47 = vmul.bf16 %v972_v44, %v968_v17  ;;  %v393_v30 = vadd.f32 %v900_v45, %v196_v58  ;;  %v384_v49 = vpop.f32.mrb[19].mxu0  ;;  %983 = vtanh.bf16 %v743_v29 }
 0x105   :  { %v758_v25 = vmul.bf16 %v974_v46, %v970_v28  ;;  %v385_v43 = vadd.f32 %v384_v49, %v1302_v48  ;;  %985 = vtanh.bf16 %v742_v10 }
 0x106   :  { %v767_v41 = vadd.bf16 %v765_v15, %v759_v47  ;;  %v723_v24 = vpack.c.bf16 %v393_v30, %v390_v31 }
 0x107   :  { %v766_v51 = vadd.bf16 %v764_v36, %v758_v25  ;;  %v722_v52 = vpack.c.bf16 %v385_v43, %v382_v50  ;;  %v976_v53 = vpop.eup %975 }
 0x108   :  { %987 = vtanh.bf16 %v723_v24  ;;  %v978_v55 = vpop.eup %977 }
 0x109   :  { %989 = vtanh.bf16 %v722_v52 }
 0x10b   :  { %v980_v56 = vpop.eup %979 }
 0x10c   :  { %v982_v57 = vpop.eup %981  ;;  %v761_v59 = vmul.bf16 %v980_v56, %v976_v53 }
 0x10d   :  { %v760_v58 = vmul.bf16 %v982_v57, %v978_v55 }
 0x10e   :  { %v769_v60 = vadd.bf16 %v767_v41, %v761_v59 }
 0x10f   :  { %v768_v61 = vadd.bf16 %v766_v51, %v760_v58  ;;  %v984_v62 = vpop.eup %983 }
 0x110   :  { %v986_v54 = vpop.eup %985 }
 0x113   :  { %v988_v27 = vpop.eup %987 }
 0x114   :  { %v990_v48 = vpop.eup %989  ;;  %v763_v26 = vmul.bf16 %v988_v27, %v984_v62 }
 0x115   :  { %v762_v63 = vmul.bf16 %v990_v48, %v986_v54 }
 0x116   :  { %v771_v0 = vadd.bf16 %v769_v60, %v763_v26 }
 0x117   :  { %v770_v19 = vadd.bf16 %v768_v61, %v762_v63 }
 0x118   :  { %991 = vtanh.bf16 %v771_v0 }
 0x119   :  { %993 = vtanh.bf16 %v770_v19 }
 0x123   :  { %v992_v18 = vpop.eup %991 }
 0x124   :  { %v994_v1 = vpop.eup %993  ;;  %v776_v5 = vunpack.c.l.bf16 %v992_v18  ;;  %v777_v6 = vunpack.c.h.bf16 %v992_v18 }
 0x125   :  { %v774_v2 = vunpack.c.l.bf16 %v994_v1  ;;  %v775_v3 = vunpack.c.h.bf16 %v994_v1 }
 0x126   :  { %v780_v4 = vmul.f32 %v776_v5, %v776_v5  ;;  %v781_v12 = vmul.f32 %v777_v6, %v777_v6 }
 0x127   :  { %v778_v8 = vmul.f32 %v774_v2, %v774_v2  ;;  %v779_v9 = vmul.f32 %v775_v3, %v775_v3 }
 0x129   :  { %v782_v7 = vadd.f32 %v779_v9, %v778_v8 }
 0x12b   :  { %v783_v13 = vadd.f32 %v782_v7, %v780_v4 }
 0x12d   :  { %v784_v33 = vadd.f32 %v783_v13, %v781_v12 }
 0x12f   :  { %v785_v20 = vrot.slane %v784_v33, 4 }
 0x131   :  { %v786_v32 = vadd.f32 %v785_v20, %v784_v33 }
 0x133   :  { %v787_v21 = vrot.slane %v786_v32, 2 }
 0x135   :  { %v788_v22 = vadd.f32 %v787_v21, %v786_v32 }
 0x137   :  { %v789_v23 = vrot.slane %v788_v22, 1 }
 0x139   :  { %v790_v15 = vadd.f32 %v789_v23, %v788_v22 }
 0x13b   :  { %v791_v14 = vmax.f32 %v790_v15, 1e-24 }
 0x13d   :  { %995 = vrsqrt.f32 %v791_v14 }
 0x147   :  { %v996_v34 = vpop.eup %995 }
 0x148   :  { %v793_v36 = vmul.f32 %v996_v34, %v774_v2  ;;  %v794_v37 = vmul.f32 %v996_v34, %v775_v3  ;;  %v795_v38 = vmul.f32 %v996_v34, %v776_v5  ;;  %v796_v39 = vmul.f32 %v996_v34, %v777_v6 }
 0x14a   :  { %797 = vst [vmem:[#allocation2] sm:$0xff] %v793_v36  ;;  %798 = vst [vmem:[#allocation2 + $0x8] sm:$0xff] %v794_v37 }
 0x14b   :  { %799 = vst [vmem:[#allocation2 + $0x10] sm:$0xff] %v795_v38  ;;  %800 = vst [vmem:[#allocation2 + $0x18] sm:$0xff] %v796_v39 }
 0x14c   :  { %1008 = shalt.err (!%p1005_p4)
}
 0x14d   :  { %s1009_s19 = scalar_lea.hbm %s1344_s7, 512 }
 0x14e   :  { %p1010_p5 = scmp.ne.s32.totalorder %s1344_s7, %s1009_s19  ;;  %p1013_p6 = scmp.lt.u32.totalorder %s1009_s19, %s1344_s7 }
 0x150   :  { %p1015_p7 = pnand %p1013_p6, %p1010_p5 }
 0x152   :  { %1018 = shalt.err (!%p1015_p7)
}
 0x153   :  { %s1023_s24 = smov 128   ;;  %s1024_s25 = smov 8  }
 0x154   :  { %812 = dma.vmem_to_hbm [thread:$0]  %s807_s6, 512, %s1344_s7, [#allocation3], %s1023_s24, %s1023_s24, %s1024_s25  }
 0x155   :  { %1019 = dma.done.wait [#allocation3], 512  }
 0x156   :  { %1020 = vsyncadd [#allocation3], 4294966784 }
 0x157   :  { %816 = vsyncpa [#allocation3], 1 }

</bundles_post_ra>
